<compile_context>
chip_gen: v6e
topology: v6e:2x2x1
jax: 0.10.0
libtpu: 0.0.40
codegen_flags: <defaults>
</compile_context>

<pallas_src>
import jax
import jax.numpy as jnp
from jax.experimental import pallas as pl
from jax.experimental.pallas import tpu as pltpu

TEMPERATURE = 0.07
BASE_TEMPERATURE = 0.07  # unused in forward (kept for parity with the module)


def _make_conloss_kernel(tq: int):
    inv_t = 1.0 / TEMPERATURE

    def kernel(q_ref, k_ref, out_ref, kn_ref):
        i = pl.program_id(1)
        eps = jnp.float32(1e-12)

        @pl.when(i == 0)
        def _():
            # Normalize k once per batch (reused by every q tile) and zero the
            # per-batch loss accumulator.  The output block index is constant
            # over the "arbitrary" q-tile axis, so it stays resident in VMEM.
            k = k_ref[0]                                                # (C, N)
            l1k = jnp.maximum(jnp.sum(jnp.abs(k), axis=0, keepdims=True), eps)
            kn_ref[...] = k / l1k
            out_ref[...] = jnp.zeros_like(out_ref)

        q = q_ref[0]                                                    # (C, TQ)
        l1q = jnp.maximum(jnp.sum(jnp.abs(q), axis=0, keepdims=True), eps)
        qn = q * (jnp.float32(inv_t) / l1q)      # 1/T folded into q normalization

        # Positives for this tile's rows: l_pos_r = <qn_r, kn_r> (already / T).
        start = pl.multiple_of(i * tq, tq)
        k_cols = kn_ref[:, pl.ds(start, tq)]                            # (C, TQ)
        lpos_sum = jnp.sum(qn * k_cols)                                 # scalar

        # (TQ, N) similarity slab on the MXU; contraction over C.
        kn = kn_ref[...]                                                # (C, N)
        logits = jnp.dot(qn.T, kn, preferred_element_type=jnp.float32)  # (TQ, N)

        # Row-wise logsumexp over the N (lane) axis.  No diag masking needed:
        # the reference's -10/T fill contributes exactly 0 after the max
        # subtraction (underflow), and the positive is already in the row.
        m = jnp.max(logits, axis=1, keepdims=True)                      # (TQ, 1)
        s = jnp.sum(jnp.exp(logits - m), axis=1, keepdims=True)         # (TQ, 1)
        lse_sum = jnp.sum(m + jnp.log(s))                               # scalar

        # sum_r (lse_r - l_pos_r) for this tile, accumulated per batch.
        out_ref[...] += lse_sum - lpos_sum

    return kernel


def _pick_tile(n: int) -> int:
    """Query-tile size: keep the (TQ, N) slab a few MiB; TQ | N and 128 | TQ."""
    if n % 256 == 0 and n > 256:
        return 256
    if n % 128 == 0:
        return 128
    return n  # small / odd N: single tile


def con_loss(feat_q, feat_k):
    """feat_q, feat_k: (B, C, H, W) float arrays. Returns the scalar loss."""
    assert feat_q.shape == feat_k.shape, (feat_q.shape, feat_k.shape)
    B, C = feat_q.shape[0], feat_q.shape[1]
    N = 1
    for s in feat_q.shape[2:]:
        N *= s

    # Keep the natural (B, C, N) layout: N on lanes, no HBM transpose pass.
    q = feat_q.reshape(B, C, N).astype(jnp.float32)
    k = feat_k.reshape(B, C, N).astype(jnp.float32)

    tq = _pick_tile(N)
    nq = N // tq

    partial = pl.pallas_call(
        _make_conloss_kernel(tq),
        out_shape=jax.ShapeDtypeStruct((B, 1, 128), jnp.float32),
        grid_spec=pltpu.PrefetchScalarGridSpec(
            num_scalar_prefetch=0,
            grid=(B, nq),
            in_specs=[
                pl.BlockSpec((1, C, tq), lambda b, i: (b, 0, i)),
                pl.BlockSpec((1, C, N), lambda b, i: (b, 0, 0)),
            ],
            out_specs=pl.BlockSpec((1, 1, 128), lambda b, i: (b, 0, 0)),
            scratch_shapes=[pltpu.VMEM((C, N), jnp.float32)],
        ),
        compiler_params=pltpu.CompilerParams(
            dimension_semantics=("parallel", "arbitrary"),
            # Modest raise over the v5e default; plenty for these tiles.  For
            # very large C*N, tile k as well or raise this further.
            vmem_limit_bytes=32 * 1024 * 1024,
        ),
    )(q, k)

    # Tiny finalize: mean over all B * N rows (CrossEntropyLoss 'mean').
    return jnp.sum(partial[:, 0, 0]) / jnp.float32(B * N)


def _reference_loss(feat_q, feat_k):
    """Pure-JAX reference mirroring the PyTorch forward exactly."""
    B, C = feat_q.shape[0], feat_q.shape[1]
    N = feat_q.shape[2] * feat_q.shape[3]
    q = jnp.transpose(feat_q.reshape(B, C, N), (0, 2, 1))
    k = jnp.transpose(feat_k.reshape(B, C, N), (0, 2, 1))
    q = q / jnp.maximum(jnp.sum(jnp.abs(q), axis=-1, keepdims=True), 1e-12)
    k = k / jnp.maximum(jnp.sum(jnp.abs(k), axis=-1, keepdims=True), 1e-12)
    l_pos = jnp.sum(q * k, axis=-1).reshape(-1, 1)          # (B*N, 1)
    l_neg = jnp.einsum("bnd,bmd->bnm", q, k)
    eye = jnp.eye(N, dtype=bool)[None]
    l_neg = jnp.where(eye, -10.0, l_neg).reshape(-1, N)
    out = jnp.concatenate([l_pos, l_neg], axis=1) / TEMPERATURE
    lse = jax.scipy.special.logsumexp(out, axis=1)
    return jnp.mean(lse - out[:, 0])


if __name__ == "__main__":
    # Small shapes consistent with the module's NCHW input convention.
    # N = H*W = 256 with TQ = 128 exercises the multi-q-tile accumulation path.
    B, C, H, W = 2, 32, 16, 16
    key = jax.random.PRNGKey(0)
    kq, kk = jax.random.split(key)
    feat_q = jax.random.normal(kq, (B, C, H, W), dtype=jnp.float32)
    feat_k = jax.random.normal(kk, (B, C, H, W), dtype=jnp.float32)

    loss = jax.block_until_ready(con_loss(feat_q, feat_k))
    ref = jax.block_until_ready(_reference_loss(feat_q, feat_k))
    assert jnp.allclose(loss, ref, rtol=1e-4, atol=1e-4), (loss, ref)
    print("KERNEL_OK")
</pallas_src>

<mosaic_0001>
module attributes {stable_mosaic.version = 11 : i64} {
  func.func @kernel(%arg0: i32, %arg1: i32, %arg2: memref<1x32x128xf32, #tpu.memory_space<vmem>>, %arg3: memref<1x32x256xf32, #tpu.memory_space<vmem>>, %arg4: memref<1x1x128xf32, #tpu.memory_space<vmem>>, %arg5: memref<32x256xf32, #tpu.memory_space<vmem>>) attributes {dimension_semantics = [#tpu.dimension_semantics<parallel>, #tpu.dimension_semantics<arbitrary>], iteration_bounds = array<i64: 2, 2>, scalar_prefetch = 0 : i64, scratch_operands = 1 : i64, tpu.core_type = #tpu.core_type<tc>, window_params = [{transform_indices = @transform_0, window_bounds = array<i64: 1, 32, 128>}, {transform_indices = @transform_1, window_bounds = array<i64: 1, 32, 256>}, {transform_indices = @transform_2, window_bounds = array<i64: 1, 1, 128>}]} {
    %c0_i32 = arith.constant 0 : i32
    %0 = arith.cmpi eq, %arg1, %c0_i32 : i32
    %1 = arith.extui %0 : i1 to i32
    %cst = arith.constant 9.99999996E-13 : f32
    %c0_i32_0 = arith.constant 0 : i32
    %2 = arith.cmpi ne, %1, %c0_i32_0 : i32
    scf.if %2 {
      %c0_20 = arith.constant 0 : index
      %c0_21 = arith.constant 0 : index
      %c0_22 = arith.constant 0 : index
      %44 = vector.load %arg3[%c0_20, %c0_21, %c0_22] : memref<1x32x256xf32, #tpu.memory_space<vmem>>, vector<1x32x256xf32>
      %45 = vector.shape_cast %44 : vector<1x32x256xf32> to vector<32x256xf32>
      %46 = math.absf %45 : vector<32x256xf32>
      %cst_23 = arith.constant dense<0.000000e+00> : vector<256xf32>
      %47 = vector.multi_reduction <add>, %46, %cst_23 [0] : vector<32x256xf32> to vector<256xf32>
      %48 = vector.shape_cast %47 : vector<256xf32> to vector<1x256xf32>
      %49 = vector.broadcast %cst : f32 to vector<1x256xf32>
      %50 = arith.maximumf %48, %49 : vector<1x256xf32>
      %51 = vector.broadcast %50 : vector<1x256xf32> to vector<32x256xf32>
      %52 = arith.divf %45, %51 : vector<32x256xf32>
      %c0_24 = arith.constant 0 : index
      %c0_25 = arith.constant 0 : index
      %53 = vector.load %arg5[%c0_24, %c0_25] : memref<32x256xf32, #tpu.memory_space<vmem>>, vector<32x256xf32>
      tpu.vector_store %arg5[%c0_24, %c0_25], %52 {strides = array<i32>} : memref<32x256xf32, #tpu.memory_space<vmem>>, vector<32x256xf32>,
      %cst_26 = arith.constant 0.000000e+00 : f32
      %54 = vector.broadcast %cst_26 : f32 to vector<1x1x128xf32>
      %c0_27 = arith.constant 0 : index
      %c0_28 = arith.constant 0 : index
      %c0_29 = arith.constant 0 : index
      %55 = vector.load %arg4[%c0_27, %c0_28, %c0_29] : memref<1x1x128xf32, #tpu.memory_space<vmem>>, vector<1x1x128xf32>
      tpu.vector_store %arg4[%c0_27, %c0_28, %c0_29], %54 {strides = array<i32>} : memref<1x1x128xf32, #tpu.memory_space<vmem>>, vector<1x1x128xf32>,
    } else {
    }
    %c0 = arith.constant 0 : index
    %c0_1 = arith.constant 0 : index
    %c0_2 = arith.constant 0 : index
    %3 = vector.load %arg2[%c0, %c0_1, %c0_2] : memref<1x32x128xf32, #tpu.memory_space<vmem>>, vector<1x32x128xf32>
    %4 = vector.shape_cast %3 : vector<1x32x128xf32> to vector<32x128xf32>
    %5 = math.absf %4 : vector<32x128xf32>
    %cst_3 = arith.constant dense<0.000000e+00> : vector<128xf32>
    %6 = vector.multi_reduction <add>, %5, %cst_3 [0] : vector<32x128xf32> to vector<128xf32>
    %7 = vector.shape_cast %6 : vector<128xf32> to vector<1x128xf32>
    %cst_4 = arith.constant 9.99999996E-13 : f32
    %8 = vector.broadcast %cst_4 : f32 to vector<1x128xf32>
    %9 = arith.maximumf %7, %8 : vector<1x128xf32>
    %cst_5 = arith.constant 14.2857141 : f32
    %10 = vector.broadcast %cst_5 : f32 to vector<1x128xf32>
    %11 = arith.divf %10, %9 : vector<1x128xf32>
    %12 = vector.broadcast %11 : vector<1x128xf32> to vector<32x128xf32>
    %13 = arith.mulf %4, %12 : vector<32x128xf32>
    %c128_i32 = arith.constant 128 : i32
    %14 = arith.muli %arg1, %c128_i32 : i32
    %15 = tpu.assume_multiple %14, 128 : i32
    %c0_6 = arith.constant 0 : index
    %16 = arith.index_cast %15 : i32 to index
    %17 = vector.load %arg5[%c0_6, %16] : memref<32x256xf32, #tpu.memory_space<vmem>>, vector<32x128xf32>
    %18 = arith.mulf %13, %17 : vector<32x128xf32>
    %19 = vector.shape_cast %18 : vector<32x128xf32> to vector<1x32x128xf32>
    %cst_7 = arith.constant dense<0.000000e+00> : vector<1xf32>
    %20 = vector.multi_reduction <add>, %19, %cst_7 [1, 2] : vector<1x32x128xf32> to vector<1xf32>
    %21 = vector.shape_cast %20 : vector<1xf32> to vector<1x1x1xf32>
    %22 = vector.extract %21[0, 0, 0] : f32 from vector<1x1x1xf32>
    %c0_8 = arith.constant 0 : index
    %c0_9 = arith.constant 0 : index
    %23 = vector.load %arg5[%c0_8, %c0_9] : memref<32x256xf32, #tpu.memory_space<vmem>>, vector<32x256xf32>
    %24 = tpu.transpose %13, [1, 0] : vector<32x128xf32> -> vector<128x32xf32>
    %cst_10 = arith.constant dense<0.000000e+00> : vector<128x256xf32>
    %25 = tpu.matmul %24, %23, %cst_10 {dimension_numbers = #tpu.dot_dimension_numbers<[1], [0], [0], [1], [0, 0, 1, 1], [], []>} : vector<128x32xf32>, vector<32x256xf32>, vector<128x256xf32> -> vector<128x256xf32>
    %cst_11 = arith.constant dense<0xFF800000> : vector<128xf32>
    %26 = vector.multi_reduction <maximumf>, %25, %cst_11 [1] : vector<128x256xf32> to vector<128xf32>
    %27 = vector.shape_cast %26 : vector<128xf32> to vector<128x1xf32>
    %28 = vector.broadcast %27 : vector<128x1xf32> to vector<128x256xf32>
    %29 = arith.subf %25, %28 : vector<128x256xf32>
    %30 = math.exp %29 : vector<128x256xf32>
    %cst_12 = arith.constant dense<0.000000e+00> : vector<128xf32>
    %31 = vector.multi_reduction <add>, %30, %cst_12 [1] : vector<128x256xf32> to vector<128xf32>
    %32 = vector.shape_cast %31 : vector<128xf32> to vector<128x1xf32>
    %33 = math.log %32 : vector<128x1xf32>
    %34 = arith.addf %27, %33 : vector<128x1xf32>
    %35 = vector.shape_cast %34 : vector<128x1xf32> to vector<1x128x1xf32>
    %cst_13 = arith.constant dense<0.000000e+00> : vector<1xf32>
    %36 = vector.multi_reduction <add>, %35, %cst_13 [1, 2] : vector<1x128x1xf32> to vector<1xf32>
    %37 = vector.shape_cast %36 : vector<1xf32> to vector<1x1x1xf32>
    %38 = vector.extract %37[0, 0, 0] : f32 from vector<1x1x1xf32>
    %c0_14 = arith.constant 0 : index
    %c0_15 = arith.constant 0 : index
    %c0_16 = arith.constant 0 : index
    %39 = vector.load %arg4[%c0_14, %c0_15, %c0_16] : memref<1x1x128xf32, #tpu.memory_space<vmem>>, vector<1x1x128xf32>
    %40 = arith.subf %38, %22 : f32
    %41 = vector.broadcast %40 : f32 to vector<1x1x128xf32>
    %42 = arith.addf %39, %41 : vector<1x1x128xf32>
    %c0_17 = arith.constant 0 : index
    %c0_18 = arith.constant 0 : index
    %c0_19 = arith.constant 0 : index
    %43 = vector.load %arg4[%c0_17, %c0_18, %c0_19] : memref<1x1x128xf32, #tpu.memory_space<vmem>>, vector<1x1x128xf32>
    tpu.vector_store %arg4[%c0_17, %c0_18, %c0_19], %42 {strides = array<i32>} : memref<1x1x128xf32, #tpu.memory_space<vmem>>, vector<1x1x128xf32>,
    return
  }
  func.func @transform_0(%arg0: i32, %arg1: i32) -> (i32, i32, i32) {
    %c0_i32 = arith.constant 0 : i32
    %c0_i32_0 = arith.constant 0 : i32
    return %arg0, %c0_i32, %arg1 : i32, i32, i32
  }
  func.func @transform_1(%arg0: i32, %arg1: i32) -> (i32, i32, i32) {
    %c0_i32 = arith.constant 0 : i32
    %c0_i32_0 = arith.constant 0 : i32
    %c0_i32_1 = arith.constant 0 : i32
    return %arg0, %c0_i32, %c0_i32_0 : i32, i32, i32
  }
  func.func @transform_2(%arg0: i32, %arg1: i32) -> (i32, i32, i32) {
    %c0_i32 = arith.constant 0 : i32
    %c0_i32_0 = arith.constant 0 : i32
    %c0_i32_1 = arith.constant 0 : i32
    return %arg0, %c0_i32, %c0_i32_0 : i32, i32, i32
  }
}

</mosaic_0001>

<bundles_post_ra>
// kernel: tpu_custom_call.1
= control target key start
LH: loop header
LB: loop body
LE: loop exit
PB: predicated region body
PF: predicated region fallthrough
CT: control target
= control target key end

     0   :  { %s1966_s0 = inlined_call_operand.hbm [shape: f32[2,32,256], index: 0, kind: input, shape index: {}]   ;;  %s1967_s1 = inlined_call_operand.hbm [shape: f32[2,32,256], index: 1, kind: input, shape index: {}]   ;;  %s1968_s2 = inlined_call_operand.hbm [shape: f32[2,1,128], index: 2, kind: output, shape index: {}]  }
   0x1   :  { %1974 = sst [smem:[#allocation15_spill]] %s1966_s0 }
   0x2   :  { %7 = vsyncpa [#allocation4], 0 }
   0x3   :  { %9 = vsyncpa [#allocation4 + $0x1], 0 }
   0x4   :  { %10 = vsyncpa [#allocation7], 0 }
   0x5   :  { %12 = vsyncpa [#allocation7 + $0x1], 0 }
   0x6   :  { %13 = vsyncpa [#allocation5], 0 }
   0x7   :  { %15 = vsyncpa [#allocation5 + $0x1], 0  ;;  %s1446_s9 = smov 0   ;;  %s1448_s10 = smov 0  }
   0x8   :  { %s1450_s11 = smov 0   ;;  %s1452_s12 = smov 0  }
   0x9   :  { %s1454_s13 = smov 0   ;;  %s1456_s14 = smov 0  }
   0xa   :  { %s1458_s15 = smov 0   ;;  %s1460_s16 = smov 0  }
   0xb   :  { %s1462_s17 = smov 0   ;;  %s1464_s18 = smov 0  }
   0xc   :  { %s1466_s19 = smov 0  }
   0xd LB: > { %1975 = sst [smem:[#allocation12_spill]] %s1416_s18  ;;  %s30_s20 = sadd.s32 1, %s1412_s17  ;;  %s1420_s19 = sphi %s1466_s19, %s21_s19   ;;  %s1416_s18 = sphi %s1464_s18, %s1992_s18   ;;  %s1412_s17 = sphi %s1462_s17, %s2000_s17   ;;  %s1408_s16 = sphi %s1460_s16, %s1990_s16   ;;  %s1404_s15 = sphi %s1458_s15, %s1999_s15   ;;  %s1400_s14 = sphi %s1456_s14, %s1998_s14   ;;  %s1396_s13 = sphi %s1454_s13, %s1997_s13   ;;  %s1392_s12 = sphi %s1452_s12, %s1996_s12   ;;  %s1388_s11 = sphi %s1450_s11, %s1995_s11   ;;  %s1384_s10 = sphi %s1448_s10, %s1994_s10   ;;  %s1380_s9 = sphi %s1446_s9, %s1993_s9  }
   0xe   : > { %s33_s21 = sadd.s32 1, %s1416_s18  ;;  %p31_p0 = scmp.ge.s32.totalorder %s30_s20, 2 }
   0xf   : > { %s42_s22 = sadd.s32 1, %s1400_s14  ;;  %p49_p1 = scmp.ne.s32.totalorder %s1400_s14, %s1396_s13 }
  0x10   : > { %p50_p2 = scmp.eq.s32.totalorder %s1420_s19, 0  ;;  %s2002_s20 = smov (%p31_p0, %s30_s20), 0 }
  0x11   : > { %1976 = sst [smem:[#allocation13_spill]] %s2002_s20  ;;  %s2004_s21 = smov (!%p31_p0, %s33_s21), %s1416_s18 }
  0x12   : > { %s38_s23 = ssub.s32 %s1412_s17, %s2002_s20  ;;  %p1514_p3 = por %p50_p2, %p49_p1 }
  0x13   : > { %p35_p4 = scmp.ge.s32.totalorder %s2004_s21, 2  ;;  %p55_p5 = scmp.ne.s32.totalorder %s1396_s13, %s1392_s12 }
  0x14   : > { %p1042_p6 = scmp.lt.s32.totalorder %s1420_s19, 4  ;;  %s131_s25 = sand.u32 1, %s1400_s14  }
  0x15   : > { %s2006_s21 = smov (%p35_p4, %s2004_s21), 0  ;;  %s982_s26 = sshll.u32 %s1416_s18, 3 }
  0x16   : > { %1978 = sst [smem:[#allocation14_spill]] %s2006_s21  ;;  %s1527_s27 = ssub.s32 %s1416_s18, %s2006_s21 }
  0x17   : > { %s39_s28 = sor.u32 %s38_s23, %s1527_s27  ;;  %p66_p7 = scmp.eq.s32.totalorder %s1527_s27, 0 }
  0x18   : > { %p40_p8 = scmp.eq.s32.totalorder %s39_s28, 0  ;;  %s981_s29 = sshll.u32 %s131_s25, 5 }
  0x19   : > { %s140_s30 = sadd.s32 %s1412_s17, %s982_s26  ;;  %s135_s5 = scalar_lea.vmem [#allocation3], %s981_s29 }
  0x1a   : > { %s1533_s3 = scalar_select %p40_p8, %s1400_s14, %s42_s22  }
  0x1b   : > { %s983_s4 = sshll.u32 %s140_s30, 7  ;;  %s143_s6 = sshll.u32 %s135_s5, 4  ;;  %s144_s6 = int_to_ptr.vmem [resolvable:$true] %s143_s6 }
  0x1c   : > { %s1979_s0 = sld [smem:[#allocation15_spill]]  ;;  %p1542_p9 = pnand %p1042_p6, %p1514_p3 }
  0x1d   : > { %p987_p10 = scmp.ge.s32.totalorder %s1420_s19, 1  ;;  %s132_s23 = scalar_lea.sflag [#allocation4], %s131_s25 }
  0x1e   : > { %p1242_p11 = pneg %p1542_p9  ;;  %s1253_s22 = scalar_lea.vmem %s144_s6, 512 }
  0x1f   : > { %p1254_p12 = scmp.ne.s32.totalorder %s144_s6, %s1253_s22  ;;  %s1422_s26 = smov [#allocation3]  }
  0x20   : > { %s1258_s28 = sshll.u32 %s1422_s26, 4  ;;  %s1259_s28 = int_to_ptr.vmem [resolvable:$false] %s1258_s28 }
  0x21   : > { %p1256_p13 = pnand %p1254_p12, %p1242_p11  ;;  %s1260_s29 = scalar_lea.vmem %s1259_s28, 1024 }
  0x22   : > { %s142_s20 = scalar_lea.hbm %s1979_s0, %s983_s4  ;;  %p1261_p1 = scmp.lt.s32.totalorder %s144_s6, %s1259_s28 }
  0x23   : > { %p1257_p0 = pneg %p1256_p13  ;;  %p1262_p4 = scmp.lt.s32.totalorder %s1260_s29, %s1253_s22 }
  0x25   : > { %p1263_p8 = por %p1262_p4, %p1261_p1 }
  0x27   : > { %p1264_p3 = pnand %p1263_p8, %p1257_p0 }
  0x29   : > { %1267 = shalt.err (!%p1264_p3)
}
  0x2a   : > { %s1971_s24 = smov 256   ;;  %s1424_s25 = smov 128  }
  0x2b   : > { %s1425_s30 = smov 8   ;;  %p172_p11 = scmp.lt.s32.totalorder %s1420_s19, 5 }
  0x2c   : > { %1034 = dma.hbm_to_vmem [thread:$0]  (!%p1542_p9), %s142_s20, 512, %s144_s6, %s132_s23, %s1971_s24, %s1424_s25, %s1425_s30  }
  0x2d   : > { %p1555_p12 = pnand %p987_p10, %p172_p11  ;;  %s977_s5 = sadd.s32 4294967295, %s1420_s19  }
  0x2e   : > { %s978_s7 = sadd.s32 4294967294, %s1420_s19   ;;  %p56_p13 = scmp.eq.s32.totalorder %s977_s5, 0 }
  0x2f   : > { %s68_s8 = sadd.s32 1, %s1388_s11  ;;  %p75_p9 = scmp.ne.s32.totalorder %s1388_s11, %s1384_s10 }
  0x30   : > { %s1565_s22 = scalar_select %p66_p7, %s1388_s11, %s68_s8  }
  0x31   : > { %p1570_p0 = por %p56_p13, %p55_p5  ;;  %p81_p1 = scmp.ne.s32.totalorder %s1384_s10, %s1380_s9 }
  0x32   : > { %p105_p10 = scmp.eq.s32.totalorder %s977_s5, 3  ;;  %p77_p4 = por %p75_p9, %p50_p2 }
  0x33   : > { %p111_p8 = scmp.eq.s32.totalorder %s978_s7, 3  ;;  %p1580_p3 = por %p81_p1, %p56_p13 }
  0x34   : > { %p1584_p11 = por %p105_p10, %p75_p9  ;;  %s153_s6 = sand.u32 1, %s1388_s11  }
  0x35   : > { %p1588_p7 = por %p111_p8, %p81_p1  ;;  %s984_s23 = sshll.u32 %s153_s6, 6 }
  0x36   : > { %s1984_s27 = scalar_select %p1584_p11, 1, 0 }
  0x37   : > { %s1985_s12 = scalar_select %p1588_p7, 1, 0 }
  0x38   : > { %s1012_s26 = sshll.u32 %s1416_s18, 10  ;;  %s157_s30 = scalar_lea.vmem [#allocation6], %s984_s23 }
  0x39   : > { %s163_s25 = scalar_lea.hbm %s1967_s1, %s1012_s26  ;;  %s164_s5 = sshll.u32 %s157_s30, 4  ;;  %s165_s5 = int_to_ptr.vmem [resolvable:$true] %s164_s5 }
  0x3a   : > { %p1599_p2 = pnand %p1042_p6, %p77_p4  ;;  %s154_s8 = scalar_lea.sflag [#allocation7], %s153_s6 }
  0x3b   : > { %s1281_s24 = scalar_lea.vmem %s165_s5, 1024  ;;  %s1426_s0 = smov [#allocation6]  }
  0x3c   : > { %p1270_p5 = pneg %p1599_p2  ;;  %p1282_p13 = scmp.ne.s32.totalorder %s165_s5, %s1281_s24 }
  0x3d   : > { %s1286_s18 = sshll.u32 %s1426_s0, 4  ;;  %s1287_s18 = int_to_ptr.vmem [resolvable:$false] %s1286_s18 }
  0x3e   : > { %p1284_p9 = pnand %p1282_p13, %p1270_p5  ;;  %s1288_s26 = scalar_lea.vmem %s1287_s18, 2048 }
  0x3f   : > { %p1289_p10 = scmp.lt.s32.totalorder %s165_s5, %s1287_s18  ;;  %p1290_p8 = scmp.lt.s32.totalorder %s1288_s26, %s1281_s24 }
  0x40   : > { %p1285_p1 = pneg %p1284_p9 }
  0x41   : > { %p1291_p7 = por %p1290_p8, %p1289_p10 }
  0x43   : > { %p1292_p11 = pnand %p1291_p7, %p1285_p1 }
  0x45   : > { %1295 = shalt.err (!%p1292_p11)
}
  0x46   : > { %s1427_s23 = smov 16   ;;  %s1987_s28 = smov 256  }
  0x47   : > { %1037 = dma.hbm_to_vmem [thread:$0]  (!%p1599_p2), %s163_s25, 1024, %s165_s5, %s154_s8, %s1987_s28, %s1987_s28, %s1427_s23  }
  0x48   : > { %176 = sbr.rel (%p1555_p12) target bundleno = 1091 (0x443), region = 28  ;;  %s178_s6 = sand.u32 (!%p1555_p12), 1, %s1396_s13  }
  0x49   : > { %s988_s0 = sshll.u32 (!%p1555_p12), %s178_s6, 5  ;;  %s179_s29 = scalar_lea.sflag (!%p1555_p12), [#allocation4], %s178_s6 }
  0x4a   : > { %s1612_s30 = scalar_lea.vmem (!%p1555_p12), [#allocation3], %s988_s0 }
  0x4d   : > { %1367 = dma.done.wait (%p1570_p0), %s179_s29, 512  }
  0x4e   : > { %1369 = vsyncadd (%p1570_p0), %s179_s29, 4294966784  ;;  %s1619_s18 = sand.u32 1, %s1384_s10  }
  0x4f   : > { %s989_s24 = sshll.u32 %s1619_s18, 6  ;;  %s188_s4 = scalar_lea.sflag [#allocation7], %s1619_s18 }
  0x50   : > { %s191_s25 = scalar_lea.vmem [#allocation6], %s989_s24 }
  0x51   : > { %1371 = dma.done.wait (%p1580_p3), %s188_s4, 1024  }
  0x52   : > { %1373 = vsyncadd (%p1580_p3), %s188_s4, 4294966272  ;;  %s1628_s5 = scalar_lea.vmem [#allocation8], %s1619_s18  ;;  %p990_p6 = scmp.ne.s32.totalorder %s1404_s15, 0 }
  0x54   : > { %219 = sbr.rel (%p990_p6) target bundleno = 132 (0x84), region = 40 }
  0x59   : > { %v220_v0 = vld [vmem:[%s191_s25] sm:$0xff]  ;;  %v222_v1 = vld [vmem:[%s191_s25 + $0x10] sm:$0xff]  ;;  %v221_v6 = vld [vmem:[%s191_s25 + $0x8] sm:$0xff]  ;;  %v1428_v7 = vmov 0.0  }
  0x5a   : > { %v224_v2 = vld [vmem:[%s191_s25 + $0x20] sm:$0xff]  ;;  %v226_v3 = vld [vmem:[%s191_s25 + $0x30] sm:$0xff]  ;;  %v228_v4 = vand.u32 2147483647, %v220_v0  ;;  %v230_v5 = vand.u32 2147483647, %v222_v1 }
  0x5b   : > { %274 = vst [vmem:[%s1628_s5] sm:$0x1] %v1428_v7  ;;  %v232_v8 = vand.u32 2147483647, %v224_v2  ;;  %v234_v9 = vand.u32 2147483647, %v226_v3  ;;  %v223_v10 = vld [vmem:[%s191_s25 + $0x18] sm:$0xff] }
  0x5c   : > { %v225_v11 = vld [vmem:[%s191_s25 + $0x28] sm:$0xff]  ;;  %v236_v12 = vadd.f32 %v230_v5, %v228_v4  ;;  %v227_v13 = vld [vmem:[%s191_s25 + $0x38] sm:$0xff]  ;;  %v229_v14 = vand.u32 2147483647, %v221_v6  ;;  %v231_v15 = vand.u32 2147483647, %v223_v10 }
  0x5d   : > { %v233_v16 = vand.u32 2147483647, %v225_v11  ;;  %v235_v18 = vand.u32 2147483647, %v227_v13 }
  0x5e   : > { %v237_v17 = vadd.f32 %v236_v12, %v232_v8  ;;  %v245_v19 = vadd.f32 %v231_v15, %v229_v14 }
  0x60   : > { %v238_v20 = vadd.f32 %v237_v17, %v234_v9  ;;  %v246_v21 = vadd.f32 %v245_v19, %v233_v16 }
  0x62   : > { %v239_v22 = vrot.slane %v238_v20, 4  ;;  %v247_v23 = vadd.f32 %v246_v21, %v235_v18 }
  0x64   : > { %v240_v24 = vadd.f32 %v239_v22, %v238_v20  ;;  %v248_v25 = vrot.slane %v247_v23, 4 }
  0x66   : > { %v241_v26 = vrot.slane %v240_v24, 2  ;;  %v249_v27 = vadd.f32 %v248_v25, %v247_v23 }
  0x68   : > { %v242_v28 = vadd.f32 %v241_v26, %v240_v24  ;;  %v250_v29 = vrot.slane %v249_v27, 2 }
  0x6a   : > { %v243_v30 = vrot.slane %v242_v28, 1  ;;  %v251_v31 = vadd.f32 %v250_v29, %v249_v27 }
  0x6c   : > { %v244_v32 = vadd.f32 %v243_v30, %v242_v28  ;;  %v252_v33 = vrot.slane %v251_v31, 1 }
  0x6e   : > { %v254_v34 = vmax.f32 %v244_v32, 1e-12  ;;  %v253_v35 = vadd.f32 %v252_v33, %v251_v31 }
  0x70   : > { %1138 = vrcp.f32 %v254_v34  ;;  %v255_v36 = vmax.f32 %v253_v35, 1e-12 }
  0x72   : > { %1140 = vrcp.f32 %v255_v36 }
  0x7d   : > { %v1139_v37 = vpop.eup %1138 }
  0x7e   : > { %v257_v38 = vmul.f32 %v1139_v37, %v220_v0  ;;  %v260_v39 = vmul.f32 %v1139_v37, %v222_v1  ;;  %v262_v40 = vmul.f32 %v1139_v37, %v224_v2  ;;  %v264_v41 = vmul.f32 %v1139_v37, %v226_v3 }
  0x7f   : > { %v1141_v42 = vpop.eup %1140 }
  0x80   : > { %266 = vst [vmem:[#allocation2] sm:$0xff] %v257_v38  ;;  %v259_v43 = vmul.f32 %v1141_v42, %v221_v6  ;;  %268 = vst [vmem:[#allocation2 + $0x10] sm:$0xff] %v260_v39  ;;  %v261_v44 = vmul.f32 %v1141_v42, %v223_v10  ;;  %v263_v45 = vmul.f32 %v1141_v42, %v225_v11 }
  0x81   : > { %270 = vst [vmem:[#allocation2 + $0x20] sm:$0xff] %v262_v40  ;;  %272 = vst [vmem:[#allocation2 + $0x30] sm:$0xff] %v264_v41  ;;  %v265_v46 = vmul.f32 %v1141_v42, %v227_v13 }
  0x82   : > { %267 = vst [vmem:[#allocation2 + $0x8] sm:$0xff] %v259_v43  ;;  %269 = vst [vmem:[#allocation2 + $0x18] sm:$0xff] %v261_v44 }
  0x83   : > { %271 = vst [vmem:[#allocation2 + $0x28] sm:$0xff] %v263_v45  ;;  %273 = vst [vmem:[#allocation2 + $0x38] sm:$0xff] %v265_v46 }
  0x84 PF: > { %v275_v47 = vld [vmem:[%s1612_s30] sm:$0xff]  ;;  %v276_v48 = vld [vmem:[%s1612_s30 + $0x8] sm:$0xff]  ;;  %v277_v49 = vld [vmem:[%s1612_s30 + $0x10] sm:$0xff]  ;;  %v1429_v53 = vmov 0.0   ;;  %vm364_vm0 = vcmask 261120   ;;  %s991_s21 = sshll.u32 %s1404_s15, 7 }
  0x85   : > { %v278_v50 = vld [vmem:[%s1612_s30 + $0x18] sm:$0xff]  ;;  %v279_v51 = vand.u32 2147483647, %v275_v47  ;;  %v280_v52 = vand.u32 2147483647, %v276_v48  ;;  %477 = vmatprep.mubr.f32.mxu0 %v1429_v53  ;;  %525 = vmatprep.mubr.f32.mxu1 %v1429_v53  ;;  %s300_s20 = sshra.s32 %s991_s21, 7 }
  0x86   : > { %v281_v54 = vand.u32 2147483647, %v277_v49  ;;  %v282_v56 = vand.u32 2147483647, %v278_v50  ;;  %s992_s7 = sshll.u32 %s300_s20, 3  ;;  %vm814_vm1 = vcmask 7168  }
  0x87   : > { %v283_v57 = vadd.f32 %v280_v52, %v279_v51  ;;  %v326_v63 = vld [vmem:[#allocation2 + $0x10] sm:$0xff]  ;;  %v324_v2 = vld [vmem:[#allocation2] sm:$0xff]  ;;  %s303_s8 = scalar_lea.vmem [#allocation2], %s992_s7  ;;  %s1009_s23 = sshll.u32 %s1408_s16, 4 }
  0x88   : > { %v330_v58 = vld [vmem:[#allocation2 + $0x30] sm:$0xff]  ;;  %v328_v60 = vld [vmem:[#allocation2 + $0x20] sm:$0xff]  ;;  %s873_s6 = sshll.u32 %s1628_s5, 4  ;;  %s871_s30 = scalar_lea.hbm %s1968_s2, %s1009_s23  ;;  %s874_s6 = int_to_ptr.vmem [resolvable:$true] %s873_s6 }
  0x89   : > { %v284_v61 = vadd.f32 %v283_v57, %v281_v54  ;;  %v327_v62 = vld [vmem:[#allocation2 + $0x18] sm:$0xff]  ;;  %v325_v0 = vld [vmem:[#allocation2 + $0x8] sm:$0xff]  ;;  %s861_s24 = scalar_lea.sflag [#allocation5], %s1619_s18  ;;  %s1296_s4 = scalar_lea.vmem %s874_s6, 16 }
  0x8a   : > { %v331_v55 = vld [vmem:[#allocation2 + $0x38] sm:$0xff]  ;;  %v329_v59 = vld [vmem:[#allocation2 + $0x28] sm:$0xff]  ;;  %p1297_p12 = scmp.ne.s32.totalorder %s874_s6, %s1296_s4  ;;  %p1988_p0 = scmp.ne.s32.totalorder %s1984_s27, 0 }
  0x8b   : > { %437 = vmatprep.subr.mxu0 %v331_v55  ;;  %1013 = vmatprep.subr.mxu1 %v331_v55  ;;  %v285_v1 = vadd.f32 %v284_v61, %v282_v56  ;;  %s1430_s25 = smov [#allocation8]  }
  0x8c   : > { %438 = vmatpush1.msra.mxu0 %v330_v58  ;;  %1017 = vmatpush1.msra.mxu1 %v330_v58  ;;  %p1298_p4 = pnand %p1297_p12, %p1988_p0  ;;  %s1300_s21 = sshll.u32 %s1430_s25, 4  ;;  %s1301_s21 = int_to_ptr.vmem [resolvable:$false] %s1300_s21 }
  0x8d   : > { %439 = vmatprep.subr.mxu0 %v329_v59  ;;  %1014 = vmatprep.subr.mxu1 %v329_v59  ;;  %v286_v3 = vrot.slane %v285_v1, 4  ;;  %s1302_s16 = scalar_lea.vmem %s1301_s21, 32  ;;  %p1303_p11 = scmp.lt.s32.totalorder %s874_s6, %s1301_s21 }
  0x8e   : > { %440 = vmatpush1.msra.mxu0 %v328_v60  ;;  %1018 = vmatpush1.msra.mxu1 %v328_v60  ;;  %p1299_p3 = pneg %p1298_p4  ;;  %p1304_p7 = scmp.lt.s32.totalorder %s1302_s16, %s1296_s4 }
  0x8f   : > { %441 = vmatprep.subr.mxu0 %v327_v62  ;;  %1015 = vmatprep.subr.mxu1 %v327_v62  ;;  %v287_v4 = vadd.f32 %v286_v3, %v285_v1 }
  0x90   : > { %442 = vmatpush1.msra.mxu0 %v326_v63  ;;  %1019 = vmatpush1.msra.mxu1 %v326_v63  ;;  %p1305_p2 = por %p1304_p7, %p1303_p11 }
  0x91   : > { %443 = vmatprep.subr.mxu0 %v325_v0  ;;  %1016 = vmatprep.subr.mxu1 %v325_v0  ;;  %v288_v5 = vrot.slane %v287_v4, 2 }
  0x92   : > { %444 = vmatpush1.msra.mxu0 %v324_v2  ;;  %1020 = vmatpush1.msra.mxu1 %v324_v2  ;;  %p1306_p5 = pnand %p1305_p2, %p1299_p3 }
  0x93   : > { %v289_v6 = vadd.f32 %v288_v5, %v287_v4 }
  0x95   : > { %v290_v7 = vrot.slane %v289_v6, 1 }
  0x97   : > { %v291_v8 = vadd.f32 %v290_v7, %v289_v6 }
  0x99   : > { %v292_v9 = vmax.f32 %v291_v8, 1e-12 }
  0x9b   : > { %1142 = vrcp.f32 %v292_v9 }
  0xa8   : > { %v1143_v10 = vpop.eup %1142 }
  0xa9   : > { %v294_v11 = vmul.f32 14.285714, %v1143_v10 }
  0xab   : > { %v1638_v12 = vmul.f32 %v294_v11, %v275_v47  ;;  %v1641_v13 = vmul.f32 %v294_v11, %v276_v48  ;;  %v1644_v14 = vmul.f32 %v294_v11, %v277_v49  ;;  %v1647_v15 = vmul.f32 %v294_v11, %v278_v50 }
  0xad   : > { %332 = vxpose.xlu0.b32.start [1/4] (short) %v1638_v12, 128 }
  0xb1   : > { %333 = vxpose.xlu0.b32.cont [2/4] (short) %v1641_v13, 128 }
  0xb5   : > { %334 = vxpose.xlu0.b32.cont [3/4] (short) %v1644_v14, 128 }
  0xb9   : > { %335 = vxpose.xlu0.b32.end [4/4] (short) %v1647_v15, 128 }
 0x129   : > { %v348_v16 = vpop.trf.xlu0 }
 0x12a   : > { %993 = vmatmul.mubr.msk.f32.vlgmr.msra.gmra.mxu0 %vm364_vm0, %v348_v16 }
 0x12b   : > { %483 = vmatprep.mubr.f32.mxu0 %v1429_v53 }
 0x12d   : > { %v349_v17 = vpop.trf.xlu0 }
 0x12e   : > { %994 = vmatmul.mubr.msk.f32.gmra.mxu0 %vm364_vm0, %v349_v17 }
 0x12f   : > { %489 = vmatprep.mubr.f32.mxu0 %v1429_v53 }
 0x131   : > { %v350_v18 = vpop.trf.xlu0 }
 0x132   : > { %995 = vmatmul.mubr.msk.f32.gmra.mxu0 %vm364_vm0, %v350_v18 }
 0x133   : > { %495 = vmatprep.mubr.f32.mxu0 %v1429_v53 }
 0x135   : > { %v351_v19 = vpop.trf.xlu0 }
 0x136   : > { %996 = vmatmul.mubr.msk.f32.gmra.mxu0 %vm364_vm0, %v351_v19 }
 0x137   : > { %501 = vmatprep.mubr.f32.mxu0 %v1429_v53 }
 0x139   : > { %v352_v20 = vpop.trf.xlu0 }
 0x13a   : > { %997 = vmatmul.mubr.msk.f32.gmra.mxu0 %vm364_vm0, %v352_v20 }
 0x13b   : > { %507 = vmatprep.mubr.f32.mxu0 %v1429_v53 }
 0x13d   : > { %v353_v21 = vpop.trf.xlu0 }
 0x13e   : > { %998 = vmatmul.mubr.msk.f32.gmra.mxu0 %vm364_vm0, %v353_v21 }
 0x13f   : > { %513 = vmatprep.mubr.f32.mxu0 %v1429_v53 }
 0x141   : > { %v354_v22 = vpop.trf.xlu0 }
 0x142   : > { %999 = vmatmul.mubr.msk.f32.gmra.mxu0 %vm364_vm0, %v354_v22 }
 0x143   : > { %519 = vmatprep.mubr.f32.mxu0 %v1429_v53 }
 0x145   : > { %v355_v23 = vpop.trf.xlu0 }
 0x146   : > { %1000 = vmatmul.mubr.msk.f32.gmra.mxu0 %vm364_vm0, %v355_v23 }
 0x149   : > { %v356_v24 = vpop.trf.xlu0 }
 0x14a   : > { %1001 = vmatmul.mubr.msk.f32.vlgmr.msra.gmra.mxu1 %vm364_vm0, %v356_v24 }
 0x14b   : > { %531 = vmatprep.mubr.f32.mxu1 %v1429_v53 }
 0x14d   : > { %v357_v25 = vpop.trf.xlu0 }
 0x14e   : > { %1002 = vmatmul.mubr.msk.f32.gmra.mxu1 %vm364_vm0, %v357_v25 }
 0x14f   : > { %537 = vmatprep.mubr.f32.mxu1 %v1429_v53 }
 0x151   : > { %v358_v26 = vpop.trf.xlu0 }
 0x152   : > { %1003 = vmatmul.mubr.msk.f32.gmra.mxu1 %vm364_vm0, %v358_v26 }
 0x153   : > { %543 = vmatprep.mubr.f32.mxu1 %v1429_v53 }
 0x155   : > { %v359_v27 = vpop.trf.xlu0 }
 0x156   : > { %1004 = vmatmul.mubr.msk.f32.gmra.mxu1 %vm364_vm0, %v359_v27 }
 0x157   : > { %549 = vmatprep.mubr.f32.mxu1 %v1429_v53 }
 0x159   : > { %v360_v28 = vpop.trf.xlu0 }
 0x15a   : > { %1005 = vmatmul.mubr.msk.f32.gmra.mxu1 %vm364_vm0, %v360_v28 }
 0x15b   : > { %555 = vmatprep.mubr.f32.mxu1 %v1429_v53 }
 0x15d   : > { %v361_v29 = vpop.trf.xlu0 }
 0x15e   : > { %1006 = vmatmul.mubr.msk.f32.gmra.mxu1 %vm364_vm0, %v361_v29 }
 0x15f   : > { %561 = vmatprep.mubr.f32.mxu1 %v1429_v53 }
 0x161   : > { %v362_v30 = vpop.trf.xlu0 }
 0x162   : > { %1007 = vmatmul.mubr.msk.f32.gmra.mxu1 %vm364_vm0, %v362_v30 }
 0x163   : > { %567 = vmatprep.mubr.f32.mxu1 %v1429_v53 }
 0x165   : > { %v363_v31 = vpop.trf.xlu0 }
 0x166   : > { %1008 = vmatmul.mubr.msk.f32.gmra.mxu1 %vm364_vm0, %v363_v31 }
 0x1ea   : > { %v1680_v32 = vpop.f32.mrf.mxu0 }
 0x1ec   : > { %v1682_v33 = vpop.f32.mrf.mxu0 }
 0x1ed   : > { %v574_v34 = vmax.f32 %v1680_v32, %v1682_v33 }
 0x1ee   : > { %v1686_v35 = vpop.f32.mrf.mxu0 }
 0x1ef   : > { %575 = vmax.xlane.f32.xlu1 %v574_v34 }
 0x1f0   : > { %v1688_v36 = vpop.f32.mrf.mxu0 }
 0x1f1   : > { %v577_v37 = vmax.f32 %v1686_v35, %v1688_v36 }
 0x1f2   : > { %v1692_v38 = vpop.f32.mrf.mxu0 }
 0x1f3   : > { %578 = vmax.xlane.f32.xlu1 %v577_v37 }
 0x1f4   : > { %v1694_v39 = vpop.f32.mrf.mxu0 }
 0x1f5   : > { %v580_v40 = vmax.f32 %v1692_v38, %v1694_v39 }
 0x1f6   : > { %v1698_v41 = vpop.f32.mrf.mxu0 }
 0x1f7   : > { %581 = vmax.xlane.f32.xlu1 %v580_v40 }
 0x1f8   : > { %v1700_v42 = vpop.f32.mrf.mxu0 }
 0x1f9   : > { %v583_v43 = vmax.f32 %v1698_v41, %v1700_v42 }
 0x1fa   : > { %v1704_v44 = vpop.f32.mrf.mxu0 }
 0x1fb   : > { %584 = vmax.xlane.f32.xlu1 %v583_v43 }
 0x1fc   : > { %v1706_v45 = vpop.f32.mrf.mxu0 }
 0x1fd   : > { %v586_v46 = vmax.f32 %v1704_v44, %v1706_v45 }
 0x1fe   : > { %v1710_v47 = vpop.f32.mrf.mxu0 }
 0x1ff   : > { %587 = vmax.xlane.f32.xlu0 %v586_v46 }
 0x200   : > { %v1712_v48 = vpop.f32.mrf.mxu0 }
 0x201   : > { %v589_v49 = vmax.f32 %v1710_v47, %v1712_v48 }
 0x202   : > { %v1716_v50 = vpop.f32.mrf.mxu0 }
 0x203   : > { %590 = vmax.xlane.f32.xlu1 %v589_v49 }
 0x204   : > { %v1718_v51 = vpop.f32.mrf.mxu0 }
 0x205   : > { %v592_v52 = vmax.f32 %v1716_v50, %v1718_v51 }
 0x206   : > { %v1722_v53 = vpop.f32.mrf.mxu0 }
 0x207   : > { %593 = vmax.xlane.f32.xlu1 %v592_v52 }
 0x208   : > { %v1724_v54 = vpop.f32.mrf.mxu0 }
 0x209   : > { %v595_v55 = vmax.f32 %v1722_v53, %v1724_v54 }
 0x20a   : > { %v1728_v56 = vpop.f32.mrf.mxu1 }
 0x20b   : > { %596 = vmax.xlane.f32.xlu1 %v595_v55 }
 0x20c   : > { %v1730_v57 = vpop.f32.mrf.mxu1 }
 0x20d   : > { %v598_v58 = vmax.f32 %v1728_v56, %v1730_v57 }
 0x20e   : > { %v1734_v59 = vpop.f32.mrf.mxu1 }
 0x20f   : > { %599 = vmax.xlane.f32.xlu1 %v598_v58 }
 0x210   : > { %v1736_v60 = vpop.f32.mrf.mxu1 }
 0x211   : > { %v601_v61 = vmax.f32 %v1734_v59, %v1736_v60 }
 0x212   : > { %v1740_v62 = vpop.f32.mrf.mxu1 }
 0x213   : > { %602 = vmax.xlane.f32.xlu1 %v601_v61 }
 0x214   : > { %v1742_v63 = vpop.f32.mrf.mxu1 }
 0x215   : > { %v604_v0 = vmax.f32 %v1740_v62, %v1742_v63 }
 0x216   : > { %v1746_v1 = vpop.f32.mrf.mxu1 }
 0x217   : > { %605 = vmax.xlane.f32.xlu1 %v604_v0 }
 0x218   : > { %v1748_v2 = vpop.f32.mrf.mxu1 }
 0x219   : > { %v607_v3 = vmax.f32 %v1746_v1, %v1748_v2 }
 0x21a   : > { %v1752_v4 = vpop.f32.mrf.mxu1 }
 0x21b   : > { %608 = vmax.xlane.f32.xlu1 %v607_v3 }
 0x21c   : > { %v1754_v5 = vpop.f32.mrf.mxu1 }
 0x21d   : > { %v610_v6 = vmax.f32 %v1752_v4, %v1754_v5 }
 0x21e   : > { %v1758_v7 = vpop.f32.mrf.mxu1 }
 0x21f   : > { %611 = vmax.xlane.f32.xlu1 %v610_v6 }
 0x220   : > { %v1760_v8 = vpop.f32.mrf.mxu1 }
 0x221   : > { %v613_v9 = vmax.f32 %v1758_v7, %v1760_v8 }
 0x222   : > { %v1764_v10 = vpop.f32.mrf.mxu1 }
 0x223   : > { %614 = vmax.xlane.f32.xlu1 %v613_v9 }
 0x224   : > { %v1766_v11 = vpop.f32.mrf.mxu1 }
 0x225   : > { %v616_v16 = vmax.f32 %v1764_v10, %v1766_v11 }
 0x226   : > { %v1770_v17 = vpop.f32.mrf.mxu1 }
 0x227   : > { %617 = vmax.xlane.f32.xlu1 %v616_v16 }
 0x228   : > { %v1772_v18 = vpop.f32.mrf.mxu1 }
 0x229   : > { %v619_v19 = vmax.f32 %v1770_v17, %v1772_v18 }
 0x22b   : > { %620 = vmax.xlane.f32.xlu1 %v619_v19 }
 0x278   : > { %v1776_v20 = vpop.xlane.xlu1 %575 }
 0x279   : > { %v622_v21 = vsub.f32 %v1680_v32, %v1776_v20  ;;  %v623_v22 = vsub.f32 %v1682_v33, %v1776_v20 }
 0x27b   : > { %v654_v23 = vmul.f32 1.442695, %v622_v21  ;;  %v656_v24 = vmul.f32 1.442695, %v623_v22 }
 0x27c   : > { %v1782_v25 = vpop.xlane.xlu1 %578 }
 0x27d   : > { %1144 = vpow2.f32 %v654_v23  ;;  %v624_v26 = vsub.f32 %v1686_v35, %v1782_v25  ;;  %v625_v27 = vsub.f32 %v1688_v36, %v1782_v25 }
 0x27e   : > { %1146 = vpow2.f32 %v656_v24 }
 0x27f   : > { %v658_v28 = vmul.f32 1.442695, %v624_v26  ;;  %v660_v29 = vmul.f32 1.442695, %v625_v27 }
 0x280   : > { %v1788_v30 = vpop.xlane.xlu1 %581 }
 0x281   : > { %1148 = vpow2.f32 %v658_v28  ;;  %v626_v31 = vsub.f32 %v1692_v38, %v1788_v30  ;;  %v627_v32 = vsub.f32 %v1694_v39, %v1788_v30 }
 0x282   : > { %1150 = vpow2.f32 %v660_v29 }
 0x283   : > { %v662_v33 = vmul.f32 1.442695, %v626_v31  ;;  %v664_v34 = vmul.f32 1.442695, %v627_v32 }
 0x284   : > { %v1794_v37 = vpop.xlane.xlu1 %584 }
 0x285   : > { %1152 = vpow2.f32 %v662_v33  ;;  %v628_v35 = vsub.f32 %v1698_v41, %v1794_v37  ;;  %v629_v36 = vsub.f32 %v1700_v42, %v1794_v37 }
 0x286   : > { %1154 = vpow2.f32 %v664_v34 }
 0x287   : > { %v666_v40 = vmul.f32 1.442695, %v628_v35  ;;  %v668_v43 = vmul.f32 1.442695, %v629_v36 }
 0x288   : > { %v1800_v46 = vpop.xlane.xlu0 %587 }
 0x289   : > { %1156 = vpow2.f32 %v666_v40  ;;  %v630_v38 = vsub.f32 %v1704_v44, %v1800_v46  ;;  %v631_v39 = vsub.f32 %v1706_v45, %v1800_v46 }
 0x28a   : > { %v1145_v49 = vpop.eup %1144  ;;  %1158 = vpow2.f32 %v668_v43 }
 0x28b   : > { %v1147_v52 = vpop.eup %1146  ;;  %v670_v55 = vmul.f32 1.442695, %v630_v38  ;;  %v672_v41 = vmul.f32 1.442695, %v631_v39 }
 0x28c   : > { %v1806_v58 = vpop.xlane.xlu1 %590  ;;  %v718_v42 = vadd.f32 %v1147_v52, %v1145_v49 }
 0x28d   : > { %1160 = vpow2.f32 %v670_v55  ;;  %v632_v61 = vsub.f32 %v1710_v47, %v1806_v58  ;;  %v633_v0 = vsub.f32 %v1712_v48, %v1806_v58 }
 0x28e   : > { %v1149_v3 = vpop.eup %1148  ;;  %1162 = vpow2.f32 %v672_v41  ;;  %719 = vadd.xlane.f32.xlu1 %v718_v42 }
 0x28f   : > { %v1151_v44 = vpop.eup %1150  ;;  %v674_v45 = vmul.f32 1.442695, %v632_v61  ;;  %v676_v6 = vmul.f32 1.442695, %v633_v0 }
 0x290   : > { %v1812_v9 = vpop.xlane.xlu1 %593  ;;  %v721_v16 = vadd.f32 %v1151_v44, %v1149_v3 }
 0x291   : > { %1164 = vpow2.f32 %v674_v45  ;;  %v634_v19 = vsub.f32 %v1716_v50, %v1812_v9  ;;  %v635_v21 = vsub.f32 %v1718_v51, %v1812_v9 }
 0x292   : > { %v1153_v47 = vpop.eup %1152  ;;  %1166 = vpow2.f32 %v676_v6  ;;  %722 = vadd.xlane.f32.xlu1 %v721_v16 }
 0x293   : > { %v1155_v48 = vpop.eup %1154  ;;  %v678_v22 = vmul.f32 1.442695, %v634_v19  ;;  %v680_v23 = vmul.f32 1.442695, %v635_v21 }
 0x294   : > { %v1818_v24 = vpop.xlane.xlu1 %596  ;;  %v724_v26 = vadd.f32 %v1155_v48, %v1153_v47 }
 0x295   : > { %1168 = vpow2.f32 %v678_v22  ;;  %v636_v27 = vsub.f32 %v1722_v53, %v1818_v24  ;;  %v637_v28 = vsub.f32 %v1724_v54, %v1818_v24 }
 0x296   : > { %v1157_v50 = vpop.eup %1156  ;;  %1170 = vpow2.f32 %v680_v23  ;;  %725 = vadd.xlane.f32.xlu1 %v724_v26 }
 0x297   : > { %v1159_v51 = vpop.eup %1158  ;;  %v682_v29 = vmul.f32 1.442695, %v636_v27  ;;  %v684_v31 = vmul.f32 1.442695, %v637_v28 }
 0x298   : > { %v1824_v32 = vpop.xlane.xlu1 %599  ;;  %v727_v33 = vadd.f32 %v1159_v51, %v1157_v50 }
 0x299   : > { %1172 = vpow2.f32 %v682_v29  ;;  %v638_v34 = vsub.f32 %v1728_v56, %v1824_v32  ;;  %v639_v35 = vsub.f32 %v1730_v57, %v1824_v32 }
 0x29a   : > { %v1161_v53 = vpop.eup %1160  ;;  %1174 = vpow2.f32 %v684_v31  ;;  %728 = vadd.xlane.f32.xlu1 %v727_v33 }
 0x29b   : > { %v1163_v54 = vpop.eup %1162  ;;  %v686_v36 = vmul.f32 1.442695, %v638_v34  ;;  %v688_v40 = vmul.f32 1.442695, %v639_v35 }
 0x29c   : > { %v1830_v43 = vpop.xlane.xlu1 %602  ;;  %v730_v38 = vadd.f32 %v1163_v54, %v1161_v53 }
 0x29d   : > { %1176 = vpow2.f32 %v686_v36  ;;  %v640_v39 = vsub.f32 %v1734_v59, %v1830_v43  ;;  %v641_v49 = vsub.f32 %v1736_v60, %v1830_v43 }
 0x29e   : > { %v1165_v56 = vpop.eup %1164  ;;  %1178 = vpow2.f32 %v688_v40  ;;  %731 = vadd.xlane.f32.xlu1 %v730_v38 }
 0x29f   : > { %v1167_v57 = vpop.eup %1166  ;;  %v690_v52 = vmul.f32 1.442695, %v640_v39  ;;  %v692_v55 = vmul.f32 1.442695, %v641_v49 }
 0x2a0   : > { %v1836_v41 = vpop.xlane.xlu1 %605  ;;  %v733_v42 = vadd.f32 %v1167_v57, %v1165_v56 }
 0x2a1   : > { %1180 = vpow2.f32 %v690_v52  ;;  %v642_v61 = vsub.f32 %v1740_v62, %v1836_v41  ;;  %v643_v0 = vsub.f32 %v1742_v63, %v1836_v41 }
 0x2a2   : > { %v1169_v59 = vpop.eup %1168  ;;  %1182 = vpow2.f32 %v692_v55  ;;  %734 = vadd.xlane.f32.xlu1 %v733_v42 }
 0x2a3   : > { %v1171_v60 = vpop.eup %1170  ;;  %v694_v3 = vmul.f32 1.442695, %v642_v61  ;;  %v696_v44 = vmul.f32 1.442695, %v643_v0 }
 0x2a4   : > { %v1842_v45 = vpop.xlane.xlu1 %608  ;;  %v736_v6 = vadd.f32 %v1171_v60, %v1169_v59 }
 0x2a5   : > { %1184 = vpow2.f32 %v694_v3  ;;  %v644_v16 = vsub.f32 %v1746_v1, %v1842_v45  ;;  %v645_v19 = vsub.f32 %v1748_v2, %v1842_v45 }
 0x2a6   : > { %v1173_v62 = vpop.eup %1172  ;;  %1186 = vpow2.f32 %v696_v44  ;;  %737 = vadd.xlane.f32.xlu1 %v736_v6 }
 0x2a7   : > { %v1175_v63 = vpop.eup %1174  ;;  %v698_v21 = vmul.f32 1.442695, %v644_v16  ;;  %v700_v47 = vmul.f32 1.442695, %v645_v19 }
 0x2a8   : > { %v1848_v48 = vpop.xlane.xlu1 %611  ;;  %v739_v22 = vadd.f32 %v1175_v63, %v1173_v62  ;;  %v304_v63 = vld [vmem:[%s303_s8] sm:$0xff] }
 0x2a9   : > { %1188 = vpow2.f32 %v698_v21  ;;  %v646_v23 = vsub.f32 %v1752_v4, %v1848_v48  ;;  %v647_v26 = vsub.f32 %v1754_v5, %v1848_v48  ;;  %v305_v21 = vld [vmem:[%s303_s8 + $0x10] sm:$0xff] }
 0x2aa   : > { %v1177_v1 = vpop.eup %1176  ;;  %1190 = vpow2.f32 %v700_v47  ;;  %740 = vadd.xlane.f32.xlu1 %v739_v22  ;;  %v306_v47 = vld [vmem:[%s303_s8 + $0x20] sm:$0xff]  ;;  %v308_v22 = vmul.f32 %v304_v63, %v1638_v12 }
 0x2ab   : > { %v1179_v2 = vpop.eup %1178  ;;  %v702_v27 = vmul.f32 1.442695, %v646_v23  ;;  %v704_v28 = vmul.f32 1.442695, %v647_v26  ;;  %v309_v23 = vmul.f32 %v305_v21, %v1641_v13  ;;  %v310_v26 = vmul.f32 %v306_v47, %v1644_v14 }
 0x2ac   : > { %v1854_v50 = vpop.xlane.xlu1 %614  ;;  %v742_v51 = vadd.f32 %v1179_v2, %v1177_v1  ;;  %v307_v2 = vld [vmem:[%s303_s8 + $0x30] sm:$0xff] }
 0x2ad   : > { %1192 = vpow2.f32 %v702_v27  ;;  %v648_v29 = vsub.f32 %v1758_v7, %v1854_v50  ;;  %v649_v31 = vsub.f32 %v1760_v8, %v1854_v50  ;;  %v312_v1 = vadd.f32 %v309_v23, %v308_v22 }
 0x2ae   : > { %v1181_v4 = vpop.eup %1180  ;;  %1194 = vpow2.f32 %v704_v28  ;;  %743 = vadd.xlane.f32.xlu1 %v742_v51  ;;  %v311_v27 = vmul.f32 %v307_v2, %v1647_v15 }
 0x2af   : > { %v1183_v5 = vpop.eup %1182  ;;  %v706_v33 = vmul.f32 1.442695, %v648_v29  ;;  %v708_v34 = vmul.f32 1.442695, %v649_v31  ;;  %v313_v28 = vadd.f32 %v312_v1, %v310_v26 }
 0x2b0   : > { %v1860_v35 = vpop.xlane.xlu1 %617  ;;  %v745_v53 = vadd.f32 %v1183_v5, %v1181_v4 }
 0x2b1   : > { %1196 = vpow2.f32 %v706_v33  ;;  %v650_v54 = vsub.f32 %v1764_v10, %v1860_v35  ;;  %v651_v36 = vsub.f32 %v1766_v11, %v1860_v35  ;;  %v314_v51 = vadd.f32 %v313_v28, %v311_v27 }
 0x2b2   : > { %v1185_v7 = vpop.eup %1184  ;;  %1198 = vpow2.f32 %v708_v34  ;;  %746 = vadd.xlane.f32.xlu1 %v745_v53 }
 0x2b3   : > { %v1187_v8 = vpop.eup %1186  ;;  %v710_v40 = vmul.f32 1.442695, %v650_v54  ;;  %v712_v38 = vmul.f32 1.442695, %v651_v36 }
 0x2b4   : > { %v1866_v39 = vpop.xlane.xlu1 %620  ;;  %v748_v49 = vadd.f32 %v1187_v8, %v1185_v7 }
 0x2b5   : > { %1200 = vpow2.f32 %v710_v40  ;;  %v652_v56 = vsub.f32 %v1770_v17, %v1866_v39  ;;  %v653_v57 = vsub.f32 %v1772_v18, %v1866_v39 }
 0x2b6   : > { %v1189_v10 = vpop.eup %1188  ;;  %1202 = vpow2.f32 %v712_v38  ;;  %749 = vadd.xlane.f32.xlu1 %v748_v49 }
 0x2b7   : > { %v1191_v11 = vpop.eup %1190  ;;  %v714_v52 = vmul.f32 1.442695, %v652_v56  ;;  %v716_v55 = vmul.f32 1.442695, %v653_v57 }
 0x2b8   : > { %v751_v42 = vadd.f32 %v1191_v11, %v1189_v10 }
 0x2b9   : > { %1204 = vpow2.f32 %v714_v52 }
 0x2ba   : > { %v1193_v61 = vpop.eup %1192  ;;  %1206 = vpow2.f32 %v716_v55  ;;  %752 = vadd.xlane.f32.xlu1 %v751_v42 }
 0x2bb   : > { %v1195_v0 = vpop.eup %1194 }
 0x2bc   : > { %v754_v59 = vadd.f32 %v1195_v0, %v1193_v61 }
 0x2be   : > { %v1197_v60 = vpop.eup %1196  ;;  %755 = vadd.xlane.f32.xlu1 %v754_v59 }
 0x2bf   : > { %v1199_v17 = vpop.eup %1198 }
 0x2c0   : > { %v757_v3 = vadd.f32 %v1199_v17, %v1197_v60 }
 0x2c2   : > { %v1201_v44 = vpop.eup %1200  ;;  %758 = vadd.xlane.f32.xlu0 %v757_v3 }
 0x2c3   : > { %v1203_v18 = vpop.eup %1202 }
 0x2c4   : > { %v760_v6 = vadd.f32 %v1203_v18, %v1201_v44 }
 0x2c6   : > { %v1205_v16 = vpop.eup %1204  ;;  %761 = vadd.xlane.f32.xlu1 %v760_v6 }
 0x2c7   : > { %v1207_v19 = vpop.eup %1206 }
 0x2c8   : > { %v763_v62 = vadd.f32 %v1207_v19, %v1205_v16 }
 0x2ca   : > { %764 = vadd.xlane.f32.xlu0 %v763_v62  ;;  %315 = vadd.xlane.f32.xlu1 %v314_v51 }
 0x317   : > { %v720_v29 = vpop.xlane.xlu1 %719 }
 0x31b   : > { %v723_v31 = vpop.xlane.xlu1 %722 }
 0x31c   : > { %1208 = vlog2.f32 %v723_v31 }
 0x31d   : > { %1210 = vlog2.f32 %v720_v29 }
 0x31f   : > { %v726_v4 = vpop.xlane.xlu1 %725 }
 0x320   : > { %1212 = vlog2.f32 %v726_v4 }
 0x323   : > { %v729_v5 = vpop.xlane.xlu1 %728 }
 0x324   : > { %1214 = vlog2.f32 %v729_v5 }
 0x327   : > { %v732_v33 = vpop.xlane.xlu1 %731 }
 0x328   : > { %1216 = vlog2.f32 %v732_v33 }
 0x329   : > { %v1209_v15 = vpop.eup %1208 }
 0x32a   : > { %v1211_v54 = vpop.eup %1210  ;;  %v769_v8 = vmul.f32 0.6931472, %v1209_v15 }
 0x32b   : > { %v735_v34 = vpop.xlane.xlu1 %734  ;;  %v767_v38 = vmul.f32 0.6931472, %v1211_v54 }
 0x32c   : > { %1218 = vlog2.f32 %v735_v34  ;;  %v799_v10 = vadd.f32 %v769_v8, %v1782_v25 }
 0x32d   : > { %v1213_v36 = vpop.eup %1212  ;;  %v798_v55 = vadd.f32 %v767_v38, %v1776_v20 }
 0x32e   : > { %v771_v49 = vmul.f32 0.6931472, %v1213_v36  ;;  %v816_v60 = vsel %vm814_vm1, %v799_v10, 0.0 }
 0x32f   : > { %v738_v53 = vpop.xlane.xlu1 %737  ;;  %v815_v25 = vsel %vm814_vm1, %v798_v55, 0.0 }
 0x330   : > { %1220 = vlog2.f32 %v738_v53  ;;  %v800_v42 = vadd.f32 %v771_v49, %v1788_v30  ;;  %v817_v30 = vadd.f32 %v816_v60, %v815_v25 }
 0x331   : > { %v1215_v40 = vpop.eup %1214 }
 0x332   : > { %v773_v11 = vmul.f32 0.6931472, %v1215_v40  ;;  %v818_v18 = vsel %vm814_vm1, %v800_v42, 0.0 }
 0x333   : > { %v741_v12 = vpop.xlane.xlu1 %740  ;;  %v819_v47 = vadd.f32 %v818_v18, %v817_v30 }
 0x334   : > { %1222 = vlog2.f32 %v741_v12  ;;  %v801_v17 = vadd.f32 %v773_v11, %v1794_v37 }
 0x335   : > { %v1217_v56 = vpop.eup %1216 }
 0x336   : > { %v775_v61 = vmul.f32 0.6931472, %v1217_v56  ;;  %v820_v62 = vsel %vm814_vm1, %v801_v17, 0.0 }
 0x337   : > { %v744_v13 = vpop.xlane.xlu1 %743  ;;  %v821_v2 = vadd.f32 %v820_v62, %v819_v47 }
 0x338   : > { %1224 = vlog2.f32 %v744_v13  ;;  %v802_v6 = vadd.f32 %v775_v61, %v1800_v46 }
 0x339   : > { %v1219_v52 = vpop.eup %1218 }
 0x33a   : > { %v777_v3 = vmul.f32 0.6931472, %v1219_v52  ;;  %v822_v22 = vsel %vm814_vm1, %v802_v6, 0.0 }
 0x33b   : > { %v747_v14 = vpop.xlane.xlu1 %746 }
 0x33c   : > { %1226 = vlog2.f32 %v747_v14  ;;  %v803_v63 = vadd.f32 %v777_v3, %v1806_v58  ;;  %v823_v58 = vadd.f32 %v822_v22, %v821_v2 }
 0x33d   : > { %v1221_v0 = vpop.eup %1220 }
 0x33e   : > { %v779_v20 = vmul.f32 0.6931472, %v1221_v0  ;;  %v824_v27 = vsel %vm814_vm1, %v803_v63, 0.0 }
 0x33f   : > { %v750_v7 = vpop.xlane.xlu1 %749  ;;  %v825_v33 = vadd.f32 %v824_v27, %v823_v58 }
 0x340   : > { %1228 = vlog2.f32 %v750_v7  ;;  %v804_v23 = vadd.f32 %v779_v20, %v1812_v9 }
 0x341   : > { %v1223_v44 = vpop.eup %1222 }
 0x342   : > { %v781_v21 = vmul.f32 0.6931472, %v1223_v44  ;;  %v826_v31 = vsel %vm814_vm1, %v804_v23, 0.0  ;;  %v855_v23 = vld [vmem:[%s1628_s5] sm:$0x1] }
 0x343   : > { %v753_v57 = vpop.xlane.xlu1 %752  ;;  %v827_v14 = vadd.f32 %v826_v31, %v825_v33 }
 0x344   : > { %1230 = vlog2.f32 %v753_v57  ;;  %v805_v28 = vadd.f32 %v781_v21, %v1818_v24 }
 0x345   : > { %v1225_v16 = vpop.eup %1224 }
 0x346   : > { %v783_v26 = vmul.f32 0.6931472, %v1225_v16  ;;  %v828_v9 = vsel %vm814_vm1, %v805_v28, 0.0 }
 0x347   : > { %v756_v59 = vpop.xlane.xlu1 %755  ;;  %v829_v36 = vadd.f32 %v828_v9, %v827_v14 }
 0x348   : > { %1232 = vlog2.f32 %v756_v59  ;;  %v806_v4 = vadd.f32 %v783_v26, %v1824_v32 }
 0x349   : > { %v1227_v37 = vpop.eup %1226 }
 0x34a   : > { %v785_v51 = vmul.f32 0.6931472, %v1227_v37  ;;  %v830_v24 = vsel %vm814_vm1, %v806_v4, 0.0 }
 0x34b   : > { %v759_v19 = vpop.xlane.xlu0 %758  ;;  %v831_v40 = vadd.f32 %v830_v24, %v829_v36 }
 0x34c   : > { %1234 = vlog2.f32 %v759_v19  ;;  %v807_v53 = vadd.f32 %v785_v51, %v1830_v43 }
 0x34d   : > { %v1229_v1 = vpop.eup %1228 }
 0x34e   : > { %v787_v5 = vmul.f32 0.6931472, %v1229_v1  ;;  %v832_v7 = vsel %vm814_vm1, %v807_v53, 0.0 }
 0x34f   : > { %v762_v46 = vpop.xlane.xlu1 %761  ;;  %v833_v56 = vadd.f32 %v832_v7, %v831_v40 }
 0x350   : > { %1236 = vlog2.f32 %v762_v46  ;;  %v808_v15 = vadd.f32 %v787_v5, %v1836_v41 }
 0x351   : > { %v1231_v29 = vpop.eup %1230 }
 0x352   : > { %v789_v12 = vmul.f32 0.6931472, %v1231_v29  ;;  %v834_v38 = vsel %vm814_vm1, %v808_v15, 0.0 }
 0x353   : > { %v765_v34 = vpop.xlane.xlu0 %764  ;;  %v835_v41 = vadd.f32 %v834_v38, %v833_v56  ;;  %v316_v18 = vpop.xlane.xlu1 %315 }
 0x354   : > { %1238 = vlog2.f32 %v765_v34  ;;  %v809_v32 = vadd.f32 %v789_v12, %v1842_v45  ;;  %v317_v6 = vrot.slane %v316_v18, 4 }
 0x355   : > { %v1233_v13 = vpop.eup %1232 }
 0x356   : > { %v791_v54 = vmul.f32 0.6931472, %v1233_v13  ;;  %v836_v57 = vsel %vm814_vm1, %v809_v32, 0.0  ;;  %v318_v20 = vadd.f32 %v317_v6, %v316_v18 }
 0x357   : > { %v837_v42 = vadd.f32 %v836_v57, %v835_v41 }
 0x358   : > { %v810_v43 = vadd.f32 %v791_v54, %v1848_v48 }
 0x359   : > { %v1235_v8 = vpop.eup %1234 }
 0x35a   : > { %v793_v49 = vmul.f32 0.6931472, %v1235_v8  ;;  %v838_v52 = vsel %vm814_vm1, %v810_v43, 0.0 }
 0x35b   : > { %v839_v59 = vadd.f32 %v838_v52, %v837_v42 }
 0x35c   : > { %v811_v10 = vadd.f32 %v793_v49, %v1854_v50 }
 0x35d   : > { %v1237_v11 = vpop.eup %1236 }
 0x35e   : > { %v795_v55 = vmul.f32 0.6931472, %v1237_v11  ;;  %v840_v61 = vsel %vm814_vm1, %v811_v10, 0.0 }
 0x35f   : > { %v841_v17 = vadd.f32 %v840_v61, %v839_v59 }
 0x360   : > { %v812_v45 = vadd.f32 %v795_v55, %v1860_v35  ;;  %v319_v35 = vrot.slane %v318_v20, 2 }
 0x361   : > { %v1239_v0 = vpop.eup %1238 }
 0x362   : > { %v797_v60 = vmul.f32 0.6931472, %v1239_v0  ;;  %v842_v48 = vsel %vm814_vm1, %v812_v45, 0.0  ;;  %v320_v16 = vadd.f32 %v319_v35, %v318_v20 }
 0x363   : > { %v843_v44 = vadd.f32 %v842_v48, %v841_v17 }
 0x364   : > { %v813_v3 = vadd.f32 %v797_v60, %v1866_v39  ;;  %v321_v30 = vrot.slane %v320_v16, 1 }
 0x366   : > { %v844_v50 = vsel %vm814_vm1, %v813_v3, 0.0  ;;  %v322_v19 = vadd.f32 %v321_v30, %v320_v16 }
 0x367   : > { %v845_v25 = vadd.f32 %v844_v50, %v843_v44 }
 0x368   : > { %1021 = vpush %v322_v19 }
 0x369   : > { %846 = vadd.xlane.f32.xlu0 %v845_v25 }
 0x399   : > { %s1022_s15 = spop %1021 }
 0x3f2   : > { %v847_v62 = vpop.xlane.xlu0 %846 }
 0x3f3   : > { %v848_v63 = vrot.slane %v847_v62, 4 }
 0x3f5   : > { %v849_v21 = vadd.f32 %v848_v63, %v847_v62 }
 0x3f7   : > { %v850_v39 = vrot.slane %v849_v21, 2 }
 0x3f9   : > { %v851_v37 = vadd.f32 %v850_v39, %v849_v21 }
 0x3fb   : > { %v852_v47 = vrot.slane %v851_v37, 1 }
 0x3fd   : > { %v853_v22 = vadd.f32 %v852_v47, %v851_v37 }
 0x3ff   : > { %1023 = vpush %v853_v22 }
 0x430   : > { %s1024_s26 = spop %1023 }
 0x431   : > { %s856_s28 = ssub.f32 %s1024_s26, %s1022_s15 }
 0x433   : > { %v857_v26 = vstv %s856_s28 }
 0x434   : > { %v858_v1 = vadd.f32 %v857_v26, %v855_v23 }
 0x436   : > { %859 = vst [vmem:[%s1628_s5] sm:$0x1] %v858_v1 }
 0x437   : > { %1309 = shalt.err (!%p1306_p5)
}
 0x438   : > { %s1310_s20 = scalar_lea.hbm %s871_s30, 16  ;;  %s1314_s7 = scalar_lea.hbm %s1968_s2, 32 }
 0x439   : > { %p1311_p13 = scmp.ne.s32.totalorder %s871_s30, %s1310_s20  ;;  %p1315_p10 = scmp.lt.s32.totalorder %s871_s30, %s1968_s2 }
 0x43a   : > { %p1316_p8 = scmp.lt.s32.totalorder %s1314_s7, %s1310_s20 }
 0x43b   : > { %p1312_p9 = pnand %p1311_p13, %p1988_p0 }
 0x43c   : > { %p1317_p6 = por %p1316_p8, %p1315_p10 }
 0x43d   : > { %p1313_p1 = pneg %p1312_p9 }
 0x43f   : > { %p1318_p12 = pnand %p1317_p6, %p1313_p1 }
 0x441   : > { %1321 = shalt.err (!%p1318_p12)
}
 0x442   : > { %1029 = dma.vmem_to_hbm [thread:$0]  (%p1988_p0), %s874_s6, 16, %s871_s30, %s861_s24  }
 0x443 PF: > { %p1043_p4 = scmp.ge.s32.totalorder %s1420_s19, 2  ;;  %s885_s26 = sand.u32 1, %s1380_s9  }
 0x444   : > { %p1989_p3 = scmp.ne.s32.totalorder %s1985_s12, 0  ;;  %s886_s23 = scalar_lea.sflag [#allocation5], %s885_s26 }
 0x446   : > { %p1039_p11 = pnand %p1043_p4, %p1989_p3 }
 0x448   : > { %p1040_p7 = pneg %p1039_p11 }
 0x44a   : > { %1375 = dma.done.wait (%p1040_p7), %s886_s23, 16  }
 0x44b   : > { %1377 = vsyncadd (%p1040_p7), %s886_s23, 4294967280  ;;  %s21_s19 = sadd.s32 1, %s1420_s19   ;;  %s1990_s16 = sld [smem:[#allocation12_spill]] }
 0x44c   : > { %p18_p2 = scmp.ge.s32.totalorder %s21_s19, 6   ;;  %s1991_s27 = sld [smem:[#allocation13_spill]] }
 0x44d   : > { %s1992_s18 = sld [smem:[#allocation14_spill]]  ;;  %s1993_s9 = smov %s1384_s10 }
 0x44e   : > { %s1994_s10 = smov %s1388_s11  ;;  %s1995_s11 = smov %s1565_s22 }
 0x44f   : > { %s1996_s12 = smov %s1396_s13  ;;  %s1997_s13 = smov %s1400_s14 }
 0x450   : > { %s1998_s14 = smov %s1533_s3  ;;  %s1999_s15 = smov %s1412_s17 }
 0x451   :  { %20 = sbr.rel (!%p18_p2) target bundleno = 13 (0xd), region = 91 }
 0x452   : > { %s2000_s17 = smov %s1991_s27 }
 0x456   :  { %890 = vsyncpa [#allocation4], 1 }
 0x457   :  { %892 = vsyncpa [#allocation4 + $0x1], 1 }
 0x458   :  { %893 = vsyncpa [#allocation7], 1 }
 0x459   :  { %895 = vsyncpa [#allocation7 + $0x1], 1 }
 0x45a   :  { %896 = vsyncpa [#allocation5], 1 }
 0x45b   :  { %898 = vsyncpa [#allocation5 + $0x1], 1 }

</bundles_post_ra>
